<compile_context>
chip_gen: v6e
topology: v6e:2x2x1
jax: 0.10.0
libtpu: 0.0.40
codegen_flags: <defaults>
</compile_context>

<pallas_src>
import functools

import jax
import jax.numpy as jnp
from jax.experimental import pallas as pl
from jax.experimental.pallas import tpu as pltpu


def _concat_attention_kernel(dec_ref, enc_ref, wdec_ref, wenc_ref, ba_ref,
                             v_ref, ctx_ref, attn_ref, *, s_real):
    TB, S, Denc = enc_ref.shape
    H = wdec_ref.shape[1]

    enc = enc_ref[...]                                    # (TB, S, Denc) bf16

    # Decoder projection: one (TB, Ddec) @ (Ddec, H) MXU matmul per tile.
    dec_proj = jnp.dot(dec_ref[...], wdec_ref[...],
                       preferred_element_type=jnp.float32)            # (TB,H)

    # Encoder projection: flatten (batch, seq) so the MXU sees one large
    # (TB*S, Denc) @ (Denc, H) matmul.  S is padded to a multiple of 16 in the
    # wrapper so this reshape is layout-trivial for bf16.
    enc_proj = jnp.dot(enc.reshape(TB * S, Denc), wenc_ref[...],
                       preferred_element_type=jnp.float32)
    enc_proj = enc_proj.reshape(TB, S, H)

    # merged = tanh(W_a([dec; enc]) + b_a)  -- f32 on the VPU/EUP.
    merged = jnp.tanh(enc_proj + dec_proj[:, None, :] + ba_ref[...])  # (TB,S,H)

    # scores[t, s] = v . merged[t, s]: VPU multiply + lane reduction over H.
    # (b_v omitted: softmax is invariant to a common additive scalar.)
    scores = jnp.sum(merged * v_ref[...], axis=-1)                    # (TB,S)

    if s_real < S:  # mask padded sequence positions (static at trace time)
        col = jax.lax.broadcasted_iota(jnp.int32, (TB, S), 1)
        scores = jnp.where(col < s_real, scores, jnp.float32(-1e30))

    m = jnp.max(scores, axis=-1, keepdims=True)
    p = jnp.exp(scores - m)
    attn = p * pl.reciprocal(jnp.sum(p, axis=-1, keepdims=True), approx=True)

    # context[t] = attn[t] @ enc[t]: VPU multiply + sublane reduction over S
    # (attn stays f32; avoids TB separate M=1 MXU matmuls).
    ctx = jnp.sum(attn[:, :, None] * enc, axis=1)                     # (TB,Denc)

    ctx_ref[...] = ctx.astype(ctx_ref.dtype)
    attn_ref[...] = attn.astype(attn_ref.dtype)


def _round_up(x, m):
    return -(-int(x) // m) * m


def _lane(d):
    return _round_up(max(int(d), 1), 128)


def _padded_tile_bytes(TB, S_p, Ddec, Denc, H):
    """Tile-padding-aware estimate of the per-grid-step VMEM working set."""
    Denc_l, H_l, S_l, Ddec_l = _lane(Denc), _lane(H), _lane(S_p), _lane(Ddec)
    TB_s = _round_up(max(TB, 1), 16)
    b = 0
    # double-buffered pipelined blocks
    b += 2 * TB * S_p * Denc_l * 2            # enc tile (bf16)
    b += 2 * TB_s * Ddec_l * 2                # dec tile (bf16)
    b += 2 * TB_s * Denc_l * 4                # context out (f32)
    b += 2 * TB_s * S_l * 4                   # attn out (f32)
    # resident params (constant index map, still double-buffered)
    b += 2 * (_round_up(Ddec, 16) + _round_up(Denc, 16)) * H_l * 2
    b += 2 * 2 * 8 * H_l * 4
    # in-kernel temporaries
    b += TB * S_p * Denc_l * 2                # flattened enc (bf16)
    b += 2 * TB * S_p * H_l * 4               # enc_proj + merged (f32)
    b += TB_s * H_l * 4                       # dec_proj
    b += 3 * TB_s * S_l * 4                   # scores / p / attn
    b += TB_s * Denc_l * 4                    # context
    return int(b)


def _vmem_targets():
    """(working-set budget, scoped vmem limit cap) per TPU generation."""
    cap = 64 << 20                             # conservative default (v7x)
    try:
        info = pltpu.get_tpu_info()
        for name in ("vmem_capacity_bytes", "vmem_bytes", "vmem_size_bytes"):
            v = getattr(info, name, None)
            if v:
                cap = int(v)
                break
    except Exception:
        pass
    if cap >= (96 << 20):                      # v5e / v6e: 128 MiB VMEM
        return 48 << 20, 96 << 20
    return 24 << 20, 40 << 20                  # v7x: 64 MiB VMEM per TC


def _pick_block_b(B, S_p, Ddec, Denc, H, budget):
    """Largest batch tile (multiple of 16 when splitting) whose padded VMEM
    working set fits `budget`; batches >= 32 are split into >= 2 blocks so the
    'parallel' grid axis can feed both TensorCores of a 2-TC chip."""
    if B < 32 and _padded_tile_bytes(_round_up(B, 16), S_p, Ddec, Denc, H) <= budget:
        return B                               # single full-batch block
    cap = _round_up(-(-B // 2), 16) if B >= 32 else _round_up(B, 16)
    cap = min(cap, 512)
    best = 16
    for tb in range(16, cap + 1, 16):
        if _padded_tile_bytes(tb, S_p, Ddec, Denc, H) <= budget:
            best = tb
    # TODO(synk): add an S-axis grid split (online-softmax accumulators) for
    # shapes where even a 16-row batch tile exceeds the VMEM budget.
    return best


def concat_attention(dec_hidden_state, enc_hidden_states, W_a, b_a, v_a, b_v,
                     *, block_b=None):
    """dec_hidden_state: (B, 1, Ddec); enc_hidden_states: (B, S, Denc).

    W_a: (H, Ddec + Denc) torch Linear weight (out, in); concat order is
    [dec_expanded, enc].  b_a: (H,), v_a: (1, H), b_v: (1,).
    Returns (context (B, 1, Denc), attn_w (B, 1, S)) like the torch module.
    """
    B, _, Ddec = dec_hidden_state.shape
    _, S, Denc = enc_hidden_states.shape
    H = W_a.shape[0]

    # Parameter prep (once, plain JAX): split W_a into dec / enc halves,
    # transpose to (in, out), cast the MXU operands to bf16.
    W_dec_T = jnp.transpose(W_a[:, :Ddec]).astype(jnp.bfloat16)   # (Ddec, H)
    W_enc_T = jnp.transpose(W_a[:, Ddec:]).astype(jnp.bfloat16)   # (Denc, H)
    b_a2 = b_a.reshape(1, H).astype(jnp.float32)
    v_row = v_a.reshape(1, H).astype(jnp.float32)                 # VPU operand
    del b_v                                    # softmax shift-invariance

    # Stream the activations in bf16: enc is the dominant HBM stream and the
    # kernel only ever consumes it at bf16 precision.
    dec2 = dec_hidden_state.reshape(B, Ddec).astype(jnp.bfloat16)
    enc = enc_hidden_states.astype(jnp.bfloat16)

    # Pad S to a multiple of 16 (bf16 sublane pack) so the in-kernel reshape
    # stays layout-trivial; padded positions are masked inside the kernel.
    S_p = _round_up(S, 16)
    if S_p != S:
        enc = jnp.pad(enc, ((0, 0), (0, S_p - S), (0, 0)))

    budget, limit_cap = _vmem_targets()
    TB = int(block_b) if block_b is not None else _pick_block_b(
        B, S_p, Ddec, Denc, H, budget)
    if TB < B and TB % 16:
        TB = _round_up(TB, 16)                 # bf16 sublane-aligned tiles
    if TB >= B:
        TB = B
    n_blocks = -(-B // TB)
    Bp = n_blocks * TB
    if Bp != B:                                # zero-pad batch to whole tiles
        dec2 = jnp.pad(dec2, ((0, Bp - B), (0, 0)))
        enc = jnp.pad(enc, ((0, Bp - B), (0, 0), (0, 0)))

    est = _padded_tile_bytes(TB, S_p, Ddec, Denc, H)
    vmem_limit = int(max(16 << 20, min(est + est // 2 + (4 << 20), limit_cap)))

    kernel = functools.partial(_concat_attention_kernel, s_real=S)

    ctx, attn = pl.pallas_call(
        kernel,
        out_shape=(
            jax.ShapeDtypeStruct((Bp, Denc), jnp.float32),
            jax.ShapeDtypeStruct((Bp, S_p), jnp.float32),
        ),
        grid=(n_blocks,),
        in_specs=[
            pl.BlockSpec((TB, Ddec), lambda i: (i, 0)),            # dec (bf16)
            pl.BlockSpec((TB, S_p, Denc), lambda i: (i, 0, 0)),    # enc (bf16)
            pl.BlockSpec((Ddec, H), lambda i: (0, 0)),             # W_dec^T
            pl.BlockSpec((Denc, H), lambda i: (0, 0)),             # W_enc^T
            pl.BlockSpec((1, H), lambda i: (0, 0)),                # b_a (f32)
            pl.BlockSpec((1, H), lambda i: (0, 0)),                # v_a (f32)
        ],
        out_specs=(
            pl.BlockSpec((TB, Denc), lambda i: (i, 0)),            # context
            pl.BlockSpec((TB, S_p), lambda i: (i, 0)),             # attn_w
        ),
        compiler_params=pltpu.CompilerParams(
            dimension_semantics=("parallel",),
            vmem_limit_bytes=vmem_limit),
    )(dec2, enc, W_dec_T, W_enc_T, b_a2, v_row)

    ctx = ctx[:B].reshape(B, 1, Denc)
    attn = attn[:B, :S].reshape(B, 1, S)
    return ctx, attn


def concat_attention_reference(dec, enc, W_a, b_a, v_a, b_v):
    """Pure-JAX (f32) replica of the torch forward for verification."""
    B, _, Ddec = dec.shape
    S = enc.shape[1]
    concat_ = jnp.concatenate(
        [jnp.broadcast_to(dec, (B, S, Ddec)), enc], axis=-1)
    merged = jnp.tanh(concat_ @ W_a.T + b_a)
    scores = merged @ v_a.T + b_v                                  # (B, S, 1)
    attn = jax.nn.softmax(jnp.swapaxes(scores, -1, -2), axis=-1)   # (B, 1, S)
    ctx = jnp.einsum('bos,bse->boe', attn, enc)                    # (B, 1, Denc)
    return ctx, attn


def _run_case(B, S, Denc, Ddec, block_b=None, seed=0):
    key = jax.random.PRNGKey(seed)
    k1, k2, k3, k4, k5, k6 = jax.random.split(key, 6)

    dec = jax.random.normal(k1, (B, 1, Ddec), dtype=jnp.float32)
    enc = jax.random.normal(k2, (B, S, Denc), dtype=jnp.float32)

    # Deterministic parameter init mirroring nn.Linear's U(-1/sqrt(fan_in), .)
    H = Ddec                                    # module: out dim = dec hidden
    fan_in_a = Denc + Ddec
    ba_bound = 1.0 / (fan_in_a ** 0.5)
    W_a = jax.random.uniform(k3, (H, fan_in_a), jnp.float32, -ba_bound, ba_bound)
    b_a = jax.random.uniform(k4, (H,), jnp.float32, -ba_bound, ba_bound)
    bv_bound = 1.0 / (H ** 0.5)
    v_a = jax.random.uniform(k5, (1, H), jnp.float32, -bv_bound, bv_bound)
    b_v = jax.random.uniform(k6, (1,), jnp.float32, -bv_bound, bv_bound)

    ctx, attn = concat_attention(dec, enc, W_a, b_a, v_a, b_v, block_b=block_b)
    jax.block_until_ready((ctx, attn))

    ctx_ref, attn_ref = concat_attention_reference(dec, enc, W_a, b_a, v_a, b_v)
    assert ctx.shape == (B, 1, Denc) and attn.shape == (B, 1, S)
    # bf16 MXU / streaming operands -> compare against pure-f32 ref at ~2e-2.
    assert jnp.allclose(ctx, ctx_ref, atol=2e-2, rtol=2e-2), \
        float(jnp.max(jnp.abs(ctx - ctx_ref)))
    assert jnp.allclose(attn, attn_ref, atol=2e-2, rtol=2e-2), \
        float(jnp.max(jnp.abs(attn - attn_ref)))


if __name__ == "__main__":
    # Small shapes consistent with the module: dec/enc hidden = 32, seq = 8.
    _run_case(B=2, S=8, Denc=32, Ddec=32)                        # single block
    _run_case(B=20, S=8, Denc=32, Ddec=32, block_b=16, seed=1)   # multi-block + pads
    print("KERNEL_OK")
</pallas_src>

<mosaic_0001>
module attributes {stable_mosaic.version = 11 : i64} {
  func.func @_concat_attention_kernel(%arg0: i32, %arg1: memref<2x32xbf16, #tpu.memory_space<vmem>>, %arg2: memref<2x16x32xbf16, #tpu.memory_space<vmem>>, %arg3: memref<32x32xbf16, #tpu.memory_space<vmem>>, %arg4: memref<32x32xbf16, #tpu.memory_space<vmem>>, %arg5: memref<1x32xf32, #tpu.memory_space<vmem>>, %arg6: memref<1x32xf32, #tpu.memory_space<vmem>>, %arg7: memref<2x32xf32, #tpu.memory_space<vmem>>, %arg8: memref<2x16xf32, #tpu.memory_space<vmem>>) attributes {dimension_semantics = [#tpu.dimension_semantics<parallel>], iteration_bounds = array<i64: 1>, scalar_prefetch = 0 : i64, scratch_operands = 0 : i64, tpu.core_type = #tpu.core_type<tc>, window_params = [{transform_indices = @transform_0, window_bounds = array<i64: 2, 32>}, {transform_indices = @transform_1, window_bounds = array<i64: 2, 16, 32>}, {pipeline_mode = #tpu.pipeline_mode<synchronous>, transform_indices = @transform_2, window_bounds = array<i64: 32, 32>}, {pipeline_mode = #tpu.pipeline_mode<synchronous>, transform_indices = @transform_3, window_bounds = array<i64: 32, 32>}, {pipeline_mode = #tpu.pipeline_mode<synchronous>, transform_indices = @transform_4, window_bounds = array<i64: 1, 32>}, {pipeline_mode = #tpu.pipeline_mode<synchronous>, transform_indices = @transform_5, window_bounds = array<i64: 1, 32>}, {transform_indices = @transform_6, window_bounds = array<i64: 2, 32>}, {transform_indices = @transform_7, window_bounds = array<i64: 2, 16>}]} {
    %c0 = arith.constant 0 : index
    %c0_0 = arith.constant 0 : index
    %c0_1 = arith.constant 0 : index
    %0 = vector.load %arg2[%c0, %c0_0, %c0_1] : memref<2x16x32xbf16, #tpu.memory_space<vmem>>, vector<2x16x32xbf16>
    %c0_2 = arith.constant 0 : index
    %c0_3 = arith.constant 0 : index
    %1 = vector.load %arg1[%c0_2, %c0_3] : memref<2x32xbf16, #tpu.memory_space<vmem>>, vector<2x32xbf16>
    %c0_4 = arith.constant 0 : index
    %c0_5 = arith.constant 0 : index
    %2 = vector.load %arg3[%c0_4, %c0_5] : memref<32x32xbf16, #tpu.memory_space<vmem>>, vector<32x32xbf16>
    %cst = arith.constant dense<0.000000e+00> : vector<2x32xf32>
    %3 = tpu.matmul %1, %2, %cst {dimension_numbers = #tpu.dot_dimension_numbers<[1], [0], [0], [1], [0, 0, 1, 1], [], []>} : vector<2x32xbf16>, vector<32x32xbf16>, vector<2x32xf32> -> vector<2x32xf32>
    %4 = vector.shape_cast %0 : vector<2x16x32xbf16> to vector<32x32xbf16>
    %c0_6 = arith.constant 0 : index
    %c0_7 = arith.constant 0 : index
    %5 = vector.load %arg4[%c0_6, %c0_7] : memref<32x32xbf16, #tpu.memory_space<vmem>>, vector<32x32xbf16>
    %cst_8 = arith.constant dense<0.000000e+00> : vector<32x32xf32>
    %6 = tpu.matmul %4, %5, %cst_8 {dimension_numbers = #tpu.dot_dimension_numbers<[1], [0], [0], [1], [0, 0, 1, 1], [], []>} : vector<32x32xbf16>, vector<32x32xbf16>, vector<32x32xf32> -> vector<32x32xf32>
    %7 = vector.shape_cast %6 : vector<32x32xf32> to vector<2x16x32xf32>
    %8 = vector.shape_cast %3 : vector<2x32xf32> to vector<2x1x32xf32>
    %9 = vector.broadcast %8 : vector<2x1x32xf32> to vector<2x16x32xf32>
    %10 = arith.addf %7, %9 : vector<2x16x32xf32>
    %c0_9 = arith.constant 0 : index
    %c0_10 = arith.constant 0 : index
    %11 = vector.load %arg5[%c0_9, %c0_10] : memref<1x32xf32, #tpu.memory_space<vmem>>, vector<1x32xf32>
    %12 = vector.shape_cast %11 : vector<1x32xf32> to vector<1x1x32xf32>
    %13 = vector.broadcast %12 : vector<1x1x32xf32> to vector<2x16x32xf32>
    %14 = arith.addf %10, %13 : vector<2x16x32xf32>
    %15 = math.tanh %14 : vector<2x16x32xf32>
    %c0_11 = arith.constant 0 : index
    %c0_12 = arith.constant 0 : index
    %16 = vector.load %arg6[%c0_11, %c0_12] : memref<1x32xf32, #tpu.memory_space<vmem>>, vector<1x32xf32>
    %17 = vector.shape_cast %16 : vector<1x32xf32> to vector<1x1x32xf32>
    %18 = vector.broadcast %17 : vector<1x1x32xf32> to vector<2x16x32xf32>
    %19 = arith.mulf %15, %18 : vector<2x16x32xf32>
    %cst_13 = arith.constant dense<0.000000e+00> : vector<2x16xf32>
    %20 = vector.multi_reduction <add>, %19, %cst_13 [2] : vector<2x16x32xf32> to vector<2x16xf32>
    %21 = tpu.iota {dimensions = array<i32: 1>} : vector<2x16xi32>
    %c8_i32 = arith.constant 8 : i32
    %22 = vector.broadcast %c8_i32 : i32 to vector<2x16xi32>
    %23 = arith.cmpi slt, %21, %22 : vector<2x16xi32>
    %cst_14 = arith.constant -1.000000e+30 : f32
    %24 = vector.broadcast %cst_14 : f32 to vector<2x16xf32>
    %25 = arith.select %23, %20, %24 : vector<2x16xi1>, vector<2x16xf32>
    %cst_15 = arith.constant dense<0xFF800000> : vector<2xf32>
    %26 = vector.multi_reduction <maximumf>, %25, %cst_15 [1] : vector<2x16xf32> to vector<2xf32>
    %27 = vector.shape_cast %26 : vector<2xf32> to vector<2x1xf32>
    %28 = vector.broadcast %27 : vector<2x1xf32> to vector<2x16xf32>
    %29 = arith.subf %25, %28 : vector<2x16xf32>
    %30 = math.exp %29 : vector<2x16xf32>
    %cst_16 = arith.constant dense<0.000000e+00> : vector<2xf32>
    %31 = vector.multi_reduction <add>, %30, %cst_16 [1] : vector<2x16xf32> to vector<2xf32>
    %32 = vector.shape_cast %31 : vector<2xf32> to vector<2x1xf32>
    %33 = tpu.reciprocal %32 {approx = true} : vector<2x1xf32> -> vector<2x1xf32>
    %34 = vector.broadcast %33 : vector<2x1xf32> to vector<2x16xf32>
    %35 = arith.mulf %30, %34 : vector<2x16xf32>
    %36 = vector.shape_cast %35 : vector<2x16xf32> to vector<2x16x1xf32>
    %37 = arith.extf %0 : vector<2x16x32xbf16> to vector<2x16x32xf32>
    %38 = vector.broadcast %36 : vector<2x16x1xf32> to vector<2x16x32xf32>
    %39 = arith.mulf %38, %37 : vector<2x16x32xf32>
    %cst_17 = arith.constant dense<0.000000e+00> : vector<2x32xf32>
    %40 = vector.multi_reduction <add>, %39, %cst_17 [1] : vector<2x16x32xf32> to vector<2x32xf32>
    %c0_18 = arith.constant 0 : index
    %c0_19 = arith.constant 0 : index
    %41 = vector.load %arg7[%c0_18, %c0_19] : memref<2x32xf32, #tpu.memory_space<vmem>>, vector<2x32xf32>
    tpu.vector_store %arg7[%c0_18, %c0_19], %40 {strides = array<i32>} : memref<2x32xf32, #tpu.memory_space<vmem>>, vector<2x32xf32>,
    %c0_20 = arith.constant 0 : index
    %c0_21 = arith.constant 0 : index
    %42 = vector.load %arg8[%c0_20, %c0_21] : memref<2x16xf32, #tpu.memory_space<vmem>>, vector<2x16xf32>
    tpu.vector_store %arg8[%c0_20, %c0_21], %35 {strides = array<i32>} : memref<2x16xf32, #tpu.memory_space<vmem>>, vector<2x16xf32>,
    return
  }
  func.func @transform_0(%arg0: i32) -> (i32, i32) {
    %c0_i32 = arith.constant 0 : i32
    %c0_i32_0 = arith.constant 0 : i32
    return %arg0, %c0_i32 : i32, i32
  }
  func.func @transform_1(%arg0: i32) -> (i32, i32, i32) {
    %c0_i32 = arith.constant 0 : i32
    %c0_i32_0 = arith.constant 0 : i32
    %c0_i32_1 = arith.constant 0 : i32
    return %arg0, %c0_i32, %c0_i32_0 : i32, i32, i32
  }
  func.func @transform_2(%arg0: i32) -> (i32, i32) {
    %c0_i32 = arith.constant 0 : i32
    %c0_i32_0 = arith.constant 0 : i32
    %c0_i32_1 = arith.constant 0 : i32
    return %c0_i32, %c0_i32_0 : i32, i32
  }
  func.func @transform_3(%arg0: i32) -> (i32, i32) {
    %c0_i32 = arith.constant 0 : i32
    %c0_i32_0 = arith.constant 0 : i32
    %c0_i32_1 = arith.constant 0 : i32
    return %c0_i32, %c0_i32_0 : i32, i32
  }
  func.func @transform_4(%arg0: i32) -> (i32, i32) {
    %c0_i32 = arith.constant 0 : i32
    %c0_i32_0 = arith.constant 0 : i32
    %c0_i32_1 = arith.constant 0 : i32
    return %c0_i32, %c0_i32_0 : i32, i32
  }
  func.func @transform_5(%arg0: i32) -> (i32, i32) {
    %c0_i32 = arith.constant 0 : i32
    %c0_i32_0 = arith.constant 0 : i32
    %c0_i32_1 = arith.constant 0 : i32
    return %c0_i32, %c0_i32_0 : i32, i32
  }
  func.func @transform_6(%arg0: i32) -> (i32, i32) {
    %c0_i32 = arith.constant 0 : i32
    %c0_i32_0 = arith.constant 0 : i32
    return %arg0, %c0_i32 : i32, i32
  }
  func.func @transform_7(%arg0: i32) -> (i32, i32) {
    %c0_i32 = arith.constant 0 : i32
    %c0_i32_0 = arith.constant 0 : i32
    return %arg0, %c0_i32 : i32, i32
  }
}

</mosaic_0001>

<bundles_post_ra>
// kernel: tpu_custom_call.1
= control target key start
LH: loop header
LB: loop body
LE: loop exit
PB: predicated region body
PF: predicated region fallthrough
CT: control target
= control target key end

     0   :  { %13 = vsyncpa [#allocation3], 0  ;;  %s748_s0 = inlined_call_operand.hbm [shape: bf16[2,32], index: 0, kind: input, shape index: {}]   ;;  %s749_s1 = inlined_call_operand.hbm [shape: bf16[2,16,32], index: 1, kind: input, shape index: {}]   ;;  %s750_s2 = inlined_call_operand.hbm [shape: bf16[32,32], index: 2, kind: input, shape index: {}]   ;;  %s751_s3 = inlined_call_operand.hbm [shape: bf16[32,32], index: 3, kind: input, shape index: {}]   ;;  %s752_s4 = inlined_call_operand.vmem [shape: f32[1,32], index: 4, kind: input, shape index: {}]   ;;  %s753_s5 = inlined_call_operand.vmem [shape: f32[1,32], index: 5, kind: input, shape index: {}]   ;;  %s754_s6 = inlined_call_operand.hbm [shape: f32[2,32], index: 6, kind: output, shape index: {0}]   ;;  %s755_s7 = inlined_call_operand.hbm [shape: f32[2,16], index: 7, kind: output, shape index: {1}]  }
   0x1   :  { %14 = vsyncpa [#allocation6], 0 }
   0x2   :  { %15 = vsyncpa [#allocation9], 0 }
   0x3   :  { %16 = vsyncpa [#allocation4], 0 }
   0x4   :  { %17 = vsyncpa [#allocation12], 0  ;;  %s626_s24 = smov [#allocation5]  }
   0x5   :  { %s33_s25 = sshll.u32 %s626_s24, 4  ;;  %s34_s25 = int_to_ptr.vmem [resolvable:$true] %s33_s25 }
   0x6   :  { %s504_s26 = scalar_lea.vmem %s34_s25, 256  ;;  %p509_p1 = scmp.lt.s32.totalorder %s34_s25, %s34_s25 }
   0x7   :  { %p505_p0 = scmp.ne.s32.totalorder %s34_s25, %s504_s26  ;;  %p510_p2 = scmp.lt.s32.totalorder %s504_s26, %s504_s26 }
   0x9   :  { %p511_p3 = por %p510_p2, %p509_p1 }
   0xb   :  { %p512_p4 = pnand %p511_p3, %p505_p0 }
   0xd   :  { %515 = shalt.err (!%p512_p4)
}
   0xe   :  { %s627_s27 = smov 64   ;;  %s628_s28 = smov 4  }
   0xf   :  { %39 = dma.hbm_to_vmem [thread:$0]  %s749_s1, 256, %s34_s25, [#allocation6], %s627_s27, %s627_s27, %s628_s28  }
  0x10   :  { %s629_s8 = smov [#allocation2]   ;;  %s630_s10 = smov [#allocation7]  }
  0x11   :  { %s24_s9 = sshll.u32 %s629_s8, 4  ;;  %s45_s11 = sshll.u32 %s630_s10, 4  ;;  %s25_s9 = int_to_ptr.vmem [resolvable:$true] %s24_s9  ;;  %s46_s11 = int_to_ptr.vmem [resolvable:$true] %s45_s11 }
  0x12   :  { %s524_s12 = scalar_lea.vmem %s25_s9, 16  ;;  %s528_s13 = scalar_lea.vmem %s25_s9, 32 }
  0x13   :  { %p525_p5 = scmp.ne.s32.totalorder %s25_s9, %s524_s12  ;;  %p529_p6 = scmp.lt.s32.totalorder %s25_s9, %s25_s9 }
  0x14   :  { %p530_p7 = scmp.lt.s32.totalorder %s528_s13, %s524_s12 }
  0x16   :  { %p531_p8 = por %p530_p7, %p529_p6 }
  0x18   :  { %p532_p9 = pnand %p531_p8, %p525_p5 }
  0x1a   :  { %535 = shalt.err (!%p532_p9)
}
  0x1b   :  { %27 = dma.hbm_to_vmem [thread:$0]  %s748_s0, 16, %s25_s9, [#allocation3]  }
  0x1c   :  { %s544_s16 = scalar_lea.vmem %s46_s11, 256  ;;  %p549_p11 = scmp.lt.s32.totalorder %s46_s11, %s46_s11 }
  0x1d   :  { %p545_p10 = scmp.ne.s32.totalorder %s46_s11, %s544_s16  ;;  %p550_p12 = scmp.lt.s32.totalorder %s544_s16, %s544_s16 }
  0x1f   :  { %p551_p13 = por %p550_p12, %p549_p11 }
  0x21   :  { %p552_p0 = pnand %p551_p13, %p545_p10 }
  0x23   :  { %555 = shalt.err (!%p552_p0)
}
  0x24   :  { %51 = dma.hbm_to_vmem [thread:$0]  %s750_s2, 256, %s46_s11, [#allocation6], %s627_s27, %s627_s27, %s628_s28  }
  0x25   :  { %s631_s18 = smov [#allocation8]  }
  0x26   :  { %s57_s19 = sshll.u32 %s631_s18, 4  ;;  %s58_s19 = int_to_ptr.vmem [resolvable:$true] %s57_s19 }
  0x27   :  { %s564_s20 = scalar_lea.vmem %s58_s19, 256  ;;  %p569_p2 = scmp.lt.s32.totalorder %s58_s19, %s58_s19 }
  0x28   :  { %p565_p1 = scmp.ne.s32.totalorder %s58_s19, %s564_s20  ;;  %p570_p3 = scmp.lt.s32.totalorder %s564_s20, %s564_s20 }
  0x2a   :  { %p571_p4 = por %p570_p3, %p569_p2 }
  0x2c   :  { %p572_p5 = pnand %p571_p4, %p565_p1 }
  0x2e   :  { %575 = shalt.err (!%p572_p5)
}
  0x2f   :  { %63 = dma.hbm_to_vmem [thread:$0]  %s751_s3, 256, %s58_s19, [#allocation9], %s627_s27, %s627_s27, %s628_s28  }
  0x30   :  { %616 = dma.done.wait [#allocation3], 16  }
  0x31   :  { %617 = vsyncadd [#allocation3], 4294967280 }
  0x32   :  { %618 = dma.done.wait [#allocation6], 512  }
  0x33   :  { %619 = vsyncadd [#allocation6], 4294966784 }
  0x34   :  { %620 = dma.done.wait [#allocation9], 256  }
  0x35   :  { %621 = vsyncadd [#allocation9], 4294967040  ;;  %v632_v0 = vmov 0.0   ;;  %vm633_vm0 = vmmov 0   ;;  %v476_v1 = vld [vmem:[#allocation7 + $0x8] sm:$0xff]   ;;  %v477_v2 = vld [vmem:[#allocation8 + $0x8] sm:$0xff]   ;;  %v231_v10 = vlaneseq }
  0x36   :  { %449 = vmatprep.subr.bf16.mxu0 %v632_v0  ;;  %453 = vmatprep.mubr.msk.bf16.mxu0 %vm633_vm0, %v632_v0  ;;  %v478_v3 = vld [vmem:[#allocation7] sm:$0xff]   ;;  %v479_v4 = vld [vmem:[#allocation8] sm:$0xff]   ;;  %vm102_vm1 = vcmask 261120   ;;  %v700_v6 = vld [vmem:[#allocation5 + $0x8] sm:$0xff]   ;;  %v634_v8 = vmov 1966171168  }
  0x37   :  { %450 = vmatpush3.bf16.msra.mxu0 %v476_v1  ;;  %457 = vmatprep.subr.bf16.mxu1 %v477_v2  ;;  %v698_v5 = vld [vmem:[#allocation5] sm:$0xff]   ;;  %v85_v7 = vld [vmem:[#allocation2] sm:$0x1]  ;;  %v229_v9 = vunpack.c.l.s4 %v634_v8  ;;  %v707_v12 = vshrl.u32 %v231_v10, 7  ;;  %v303_v51 = vand.u32 127, %v231_v10  ;;  %vm318_vm2 = vcmask 130112  }
  0x38   :  { %451 = vmatprep.subr.bf16.mxu0 %v632_v0  ;;  %458 = vmatpush3.bf16.msra.mxu1 %v477_v2  ;;  %v440_v25 = vld [vmem:[%s752_s4] ss:$0 sm:$0xff]  ;;  %vm329_vm3 = vcmask 1041409   ;;  %vm333_vm5 = vcmask 123904   ;;  %s635_s4 = smov [#allocation11]  }
  0x39   :  { %459 = vmatprep.subr.bf16.mxu1 %v479_v4  ;;  %461 = vmatprep.mubr.msk.bf16.mxu1 %vm102_vm1, %v698_v5  ;;  %v230_v11 = vunpack.c.0.s8 %v229_v9  ;;  %v711_v16 = vsub.s32 0, %v707_v12  ;;  %v441_v38 = vld [vmem:[%s753_s5] ss:$0 sm:$0xff]  ;;  %v313_v52 = vadd.s32 4294967288, %v303_v51  ;;  %v311_v56 = vsub.s32 %v303_v51, %v707_v12  ;;  %s416_s5 = sshll.u32 %s635_s4, 4  ;;  %s417_s5 = int_to_ptr.vmem [resolvable:$true] %s416_s5 }
  0x3a   :  { %vm304_vm4 = vcmp.lt.s32.totalorder %v303_v51, 8  ;;  %s576_s24 = scalar_lea.vmem %s417_s5, 32  ;;  %p581_p7 = scmp.lt.s32.totalorder %s417_s5, %s417_s5 }
  0x3b   :  { %452 = vmatpush3.bf16.msra.mxu0 %v478_v3  ;;  %v233_v13 = vsub.s32 %v230_v11, %v707_v12  ;;  %v316_v54 = vsub.s32 %v313_v52, %v707_v12  ;;  %p577_p6 = scmp.ne.s32.totalorder %s417_s5, %s576_s24  ;;  %p582_p8 = scmp.lt.s32.totalorder %s576_s24, %s576_s24 }
  0x3c   :  { %460 = vmatpush3.bf16.msra.mxu1 %v479_v4 }
  0x3d   :  { %p583_p9 = por %p582_p8, %p581_p7 }
  0x3e   :  { %454 = vmatmul.mubr.msk.bf16.vlgmr.msra.gmra.mxu0 %vm102_vm1, %v85_v7 }
  0x3f   :  { %462 = vmatmul.mubr.msk.bf16.vlgmr.msra.gmra.mxu1 %vm102_vm1, %v700_v6  ;;  %p584_p10 = pnand %p583_p9, %p577_p6 }
  0xfe   :  { %v140_v14 = vpop.f32.mrf.mxu0 }
  0xff   :  { %v234_v15 = vrot.slane %v140_v14, %v233_v13  ;;  %v463_v17 = vpop.f32.mrf.mxu1 }
 0x100   :  { %v455_v18 = vpop.f32.mrf.mxu0 }
 0x101   :  { %v235_v19 = vcombine.high %v234_v15, %v234_v15  ;;  %v242_v20 = vrot.slane %v234_v15, %v233_v13  ;;  %v212_v21 = vpop.f32.mrf.mxu1 }
 0x102   :  { %v143_v22 = vpop.f32.mrf.mxu0 }
 0x103   :  { %v249_v23 = vrot.slane %v235_v19, %v233_v13  ;;  %v253_v24 = vrot.slane %v242_v20, %v711_v16  ;;  %v464_v26 = vpop.f32.mrf.mxu1 }
 0x104   :  { %v456_v27 = vpop.f32.mrf.mxu0 }
 0x105   :  { %v257_v28 = vrot.slane %v249_v23, %v711_v16  ;;  %v260_v29 = vadd.f32 %v253_v24, %v212_v21  ;;  %v215_v30 = vpop.f32.mrf.mxu1 }
 0x106   :  { %v261_v34 = vadd.f32 %v253_v24, %v215_v30 }
 0x107   :  { %v262_v31 = vadd.f32 %v463_v17, %v257_v28  ;;  %v271_v32 = vadd.f32 %v440_v25, %v260_v29  ;;  %v263_v33 = vadd.f32 %v464_v26, %v257_v28  ;;  %v358_v17 = vsub.s32 1, %v707_v12 }
 0x108   :  { %v272_v37 = vadd.f32 %v440_v25, %v261_v34 }
 0x109   :  { %v273_v35 = vadd.f32 %v440_v25, %v262_v31  ;;  %484 = vtanh.f32 %v271_v32  ;;  %v274_v36 = vadd.f32 %v440_v25, %v263_v33 }
 0x10b   :  { %486 = vtanh.f32 %v273_v35 }
 0x10c   :  { %488 = vtanh.f32 %v274_v36 }
 0x10d   :  { %490 = vtanh.f32 %v272_v37 }
 0x116   :  { %v485_v39 = vpop.eup %484 }
 0x117   :  { %v286_v40 = vmul.f32 %v485_v39, %v441_v38 }
 0x118   :  { %v487_v41 = vpop.eup %486 }
 0x119   :  { %v489_v42 = vpop.eup %488  ;;  %v290_v43 = vsel %vm102_vm1, %v286_v40, 0.0  ;;  %v288_v44 = vmul.f32 %v487_v41, %v441_v38 }
 0x11a   :  { %v491_v45 = vpop.eup %490  ;;  %291 = vadd.xlane.f32.xlu0 %v290_v43  ;;  %v289_v48 = vmul.f32 %v489_v42, %v441_v38 }
 0x11b   :  { %v296_v46 = vsel %vm102_vm1, %v288_v44, 0.0  ;;  %v287_v47 = vmul.f32 %v491_v45, %v441_v38 }
 0x11c   :  { %297 = vadd.xlane.f32.xlu1 %v296_v46  ;;  %v299_v50 = vsel %vm102_vm1, %v289_v48, 0.0 }
 0x11d   :  { %v293_v49 = vsel %vm102_vm1, %v287_v47, 0.0 }
 0x11e   :  { %294 = vadd.xlane.f32.xlu0 %v293_v49 }
 0x120   :  { %300 = vadd.xlane.f32.xlu1 %v299_v50 }
 0x1a3   :  { %v292_v53 = vpop.xlane.xlu0 %291 }
 0x1a4   :  { %v312_v60 = vrot.slane %v292_v53, %v311_v56 }
 0x1a5   :  { %v298_v55 = vpop.xlane.xlu1 %297 }
 0x1a6   :  { %v323_v61 = vrot.slane %v298_v55, %v311_v56 }
 0x1a7   :  { %v295_v57 = vpop.xlane.xlu0 %294 }
 0x1a8   :  { %v317_v58 = vrot.slane %v295_v57, %v316_v54 }
 0x1a9   :  { %v301_v59 = vpop.xlane.xlu1 %300 }
 0x1aa   :  { %v327_v62 = vrot.slane %v301_v59, %v316_v54  ;;  %v319_v63 = vsel %vm318_vm2, %v317_v58, %v312_v60 }
 0x1ac   :  { %v328_v0 = vsel %vm318_vm2, %v327_v62, %v323_v61 }
 0x1ad   :  { %v330_v1 = vsel %vm329_vm3, %v328_v0, %v319_v63 }
 0x1ae   :  { %v332_v2 = vsel %vm304_vm4, %v330_v1, -1e+30 }
 0x1af   :  { %v334_v3 = vsel %vm333_vm5, %v332_v2, -inf }
 0x1b0   :  { %335 = vmax.xlane.f32.xlu0 %v334_v3 }
 0x239   :  { %v336_v4 = vpop.xlane.xlu0 %335 }
 0x23a   :  { %v337_v7 = vsub.f32 %v332_v2, %v336_v4 }
 0x23c   :  { %v338_v8 = vmul.f32 1.442695, %v337_v7 }
 0x23e   :  { %492 = vpow2.f32 %v338_v8 }
 0x24b   :  { %v493_v9 = vpop.eup %492 }
 0x24c   :  { %v340_v10 = vsel %vm333_vm5, %v493_v9, 0.0 }
 0x24d   :  { %341 = vadd.xlane.f32.xlu1 %v340_v10 }
 0x2d6   :  { %v342_v11 = vpop.xlane.xlu1 %341 }
 0x2d7   :  { %494 = vrcp.f32 %v342_v11 }
 0x2e4   :  { %v495_v13 = vpop.eup %494 }
 0x2e5   :  { %v344_v14 = vmul.f32 %v495_v13, %v493_v9 }
 0x2e7   :  { %v348_v15 = vrot.slane %v344_v14, %v711_v16  ;;  %399 = vst.msk [vmem:[#allocation11] sm:$0x3] %vm333_vm5, %v344_v14  ;;  %v359_v18 = vrot.slane %v344_v14, %v358_v17 }
 0x2e9   :  { %354 = vbcast.lane.b32.xlu1 %v348_v15, 264  ;;  %350 = vbcast.lane.b32.xlu0 %v348_v15, 256 }
 0x2ed   :  { %361 = vbcast.lane.b32.xlu1 %v359_v18, 256 }
 0x2f1   :  { %365 = vbcast.lane.b32.xlu1 %v359_v18, 264 }
 0x2f2   :  { %587 = shalt.err (!%p584_p10)
}
 0x2f3   :  { %419 = dma.vmem_to_hbm [thread:$0]  %s417_s5, 32, %s755_s7, [#allocation12]   ;;  %v368_v12 = vunpack.c.h.bf16 %v698_v5  ;;  %v367_v16 = vunpack.c.l.bf16 %v698_v5  ;;  %v369_v25 = vunpack.c.l.bf16 %v700_v6  ;;  %v370_v28 = vunpack.c.h.bf16 %v700_v6 }
 0x2f4   :  { %s636_s7 = smov [#allocation10]   ;;  %vm397_vm6 = vcmask 254976  }
 0x2f5   :  { %s406_s27 = sshll.u32 %s636_s7, 4  ;;  %s407_s27 = int_to_ptr.vmem [resolvable:$true] %s406_s27 }
 0x2f6   :  { %s596_s28 = scalar_lea.vmem %s407_s27, 32  ;;  %p601_p12 = scmp.lt.s32.totalorder %s407_s27, %s407_s27 }
 0x2f7   :  { %p597_p11 = scmp.ne.s32.totalorder %s407_s27, %s596_s28  ;;  %p602_p13 = scmp.lt.s32.totalorder %s596_s28, %s596_s28 }
 0x2f9   :  { %p603_p0 = por %p602_p13, %p601_p12 }
 0x2fb   :  { %p604_p1 = pnand %p603_p0, %p597_p11 }
 0x35b   :  { %v355_v19 = vpop.permute.xlu1 %354  ;;  %v351_v20 = vpop.permute.xlu0 %350 }
 0x35c   :  { %v372_v21 = vmul.f32 %v368_v12, %v355_v19  ;;  %v371_v22 = vmul.f32 %v367_v16, %v351_v20 }
 0x35e   :  { %v376_v23 = vsel %vm102_vm1, %v372_v21, 0.0  ;;  %v375_v24 = vsel %vm102_vm1, %v371_v22, 0.0 }
 0x35f   :  { %v377_v26 = vadd.f32 %v376_v23, %v375_v24  ;;  %v362_v27 = vpop.permute.xlu1 %361 }
 0x360   :  { %v373_v30 = vmul.f32 %v369_v25, %v362_v27 }
 0x361   :  { %v378_v29 = vrot.slane %v377_v26, 4 }
 0x362   :  { %v384_v5 = vsel %vm102_vm1, %v373_v30, 0.0 }
 0x363   :  { %v379_v31 = vadd.f32 %v378_v29, %v377_v26  ;;  %v366_v32 = vpop.permute.xlu1 %365 }
 0x364   :  { %v374_v33 = vmul.f32 %v370_v28, %v366_v32 }
 0x365   :  { %v380_v35 = vrot.slane %v379_v31, 2 }
 0x366   :  { %v385_v34 = vsel %vm102_vm1, %v374_v33, 0.0 }
 0x367   :  { %v386_v36 = vadd.f32 %v385_v34, %v384_v5  ;;  %v381_v38 = vadd.f32 %v380_v35, %v379_v31 }
 0x369   :  { %v387_v37 = vrot.slane %v386_v36, 4  ;;  %v382_v41 = vrot.slane %v381_v38, 1 }
 0x36b   :  { %v388_v39 = vadd.f32 %v387_v37, %v386_v36  ;;  %v383_v6 = vadd.f32 %v382_v41, %v381_v38 }
 0x36d   :  { %v389_v40 = vrot.slane %v388_v39, 2 }
 0x36f   :  { %v390_v42 = vadd.f32 %v389_v40, %v388_v39 }
 0x371   :  { %v391_v43 = vrot.slane %v390_v42, 1 }
 0x373   :  { %v392_v44 = vadd.f32 %v391_v43, %v390_v42 }
 0x375   :  { %v395_v45 = vsel %vm329_vm3, %v392_v44, %v383_v6 }
 0x376   :  { %398 = vst.msk [vmem:[#allocation10] sm:$0x3] %vm397_vm6, %v395_v45 }
 0x377   :  { %607 = shalt.err (!%p604_p1)
}
 0x378   :  { %409 = dma.vmem_to_hbm [thread:$0]  %s407_s27, 32, %s754_s6, [#allocation4]  }
 0x379   :  { %622 = dma.done.wait [#allocation4], 32  }
 0x37a   :  { %623 = vsyncadd [#allocation4], 4294967264 }
 0x37b   :  { %624 = dma.done.wait [#allocation12], 32  }
 0x37c   :  { %625 = vsyncadd [#allocation12], 4294967264 }
 0x37d   :  { %426 = vsyncpa [#allocation3], 1 }
 0x37e   :  { %427 = vsyncpa [#allocation6], 1 }
 0x37f   :  { %428 = vsyncpa [#allocation9], 1 }
 0x380   :  { %429 = vsyncpa [#allocation4], 1 }
 0x381   :  { %430 = vsyncpa [#allocation12], 1 }

</bundles_post_ra>
